<compile_context>
chip_gen: v6e
topology: v6e:2x2x1
jax: 0.10.0
libtpu: 0.0.40
codegen_flags: <defaults>
</compile_context>

<pallas_src>
import functools

import numpy as np
import jax
import jax.numpy as jnp
from jax import lax
from jax.experimental import pallas as pl
from jax.experimental.pallas import tpu as pltpu

LEAKY_SLOPE = 0.2
NUM_LAYERS = 4


def _leaky(x):
    return jnp.where(x > 0, x, LEAKY_SLOPE * x)


# ---------------------------------------------------------------------------
# Fused SPP kernel. One grid step per batch element.
#   x block   : (1, H, W*C)    channels-last bf16
#   pstack    : (Sh, H)        stacked H avg-pool operators (Sh = sum_l h_l)
#   rpw_wide  : (W*C, Swc)     stacked Kron(PW^T, W1^T)     (Swc = sum_l w_l*C)
#   brow_wide : (1, Swc)       stacked 1x1-conv biases (f32)
#   mask      : (Sh, Swc)      block-diagonal 0/1 mask (per-level pairing)
#   uh_cat    : (H, Sh)        stacked bilinear H upsample operators
#   gid_all   : (W*C, 3*W*Cout)  identity-branch fusion weights, per-dy blocks
#   glvl_all  : (Swc, 3*W*Cout)  level-branch fusion weights (ruw folded in)
#   bfrow     : (1, W*Cout)    fusion-conv bias (f32)
#   out block : (1, H, W*Cout) f32
# ---------------------------------------------------------------------------
def _spp_kernel(x_ref, pstack_ref, rpw_ref, brow_ref, mask_ref, uhcat_ref,
                gid_ref, glvl_ref, bfrow_ref, o_ref, *, H, WCout):
    f32 = jnp.float32
    bf16 = jnp.bfloat16

    x = x_ref[0]                                                    # (H, W*C) bf16

    # 1) merged H-avg-pool for all 4 pyramid levels (one MXU op instead of 4)
    a = jnp.dot(pstack_ref[...], x, preferred_element_type=f32)     # (Sh, W*C)

    # 2) W-avg-pool + 1x1 conv + bias + LeakyReLU for all levels at once,
    #    then zero the cross-level (off-diagonal) blocks with a VPU mask.
    b = jnp.dot(a.astype(bf16), rpw_ref[...], preferred_element_type=f32)
    b = _leaky(b + brow_ref[...])                                   # (Sh, Swc)
    b = b.astype(bf16) * mask_ref[...]                              # block-diagonal

    # 3) merged bilinear H-upsample for all levels
    d = jnp.dot(uhcat_ref[...], b, preferred_element_type=f32)      # (H, Swc)

    # 4) fusion 3x3 conv: bilinear W-upsample + reflect W-shift + conv weights are
    #    all folded into gid/glvl host-side; single f32 accumulation target,
    #    3 output column blocks = the 3 kernel rows (dy).
    s = jnp.dot(x, gid_ref[...], preferred_element_type=f32)        # identity branch
    s = s + jnp.dot(d.astype(bf16), glvl_ref[...],
                    preferred_element_type=f32)                     # (H, 3*WCout)

    # 5) reflect row shift (ReflectionPad2d along H) on XLU/VPU, not the MXU:
    #    dy=1 is identity; dy=0 / dy=2 are +-1 row shifts with a reflected edge row.
    s0 = s[:, :WCout]
    s1 = s[:, WCout:2 * WCout]
    s2 = s[:, 2 * WCout:]
    r0 = jnp.concatenate([s0[1:2, :], s0[:H - 1, :]], axis=0)       # out[y]=s0[reflect(y-1)]
    r2 = jnp.concatenate([s2[1:, :], s2[H - 2:H - 1, :]], axis=0)   # out[y]=s2[reflect(y+1)]

    out = _leaky(s1 + r0 + r2 + bfrow_ref[...])
    o_ref[0] = out.astype(o_ref.dtype)                              # lane-dense (H, W*Cout)


# ---------------------------------------------------------------------------
# Deterministic operator-matrix construction (host-side numpy glue).
# ---------------------------------------------------------------------------
def _pool_matrix(out_size, in_size):
    k = in_size // out_size
    m = np.zeros((out_size, in_size), dtype=np.float32)
    for a in range(out_size):
        m[a, a * k:(a + 1) * k] = 1.0 / k
    return m


def _upsample_matrix(out_size, in_size):
    # bilinear, align_corners=False (PyTorch F.interpolate default)
    m = np.zeros((out_size, in_size), dtype=np.float32)
    scale = in_size / out_size
    for i in range(out_size):
        src = max((i + 0.5) * scale - 0.5, 0.0)
        i0 = min(int(np.floor(src)), in_size - 1)
        i1 = min(i0 + 1, in_size - 1)
        lam = src - i0
        m[i, i0] += 1.0 - lam
        m[i, i1] += lam
    return m


def _reflect(t, size):
    if t < 0:
        return -t
    if t >= size:
        return 2 * size - 2 - t
    return t


def init_params(key, C, Cout):
    """Parameters in PyTorch conventions: Conv2d weight = (Cout, Cin[,kh,kw])."""
    keys = jax.random.split(key, 2 * NUM_LAYERS + 2)
    params = {'w1': [], 'b1': []}
    for lvl in range(NUM_LAYERS):
        params['w1'].append(
            0.3 * jax.random.normal(keys[2 * lvl], (C, C), jnp.float32))
        params['b1'].append(
            0.1 * jax.random.normal(keys[2 * lvl + 1], (C,), jnp.float32))
    cin5 = C * (NUM_LAYERS + 1)
    params['wf'] = 0.1 * jax.random.normal(keys[-2], (Cout, cin5, 3, 3),
                                           jnp.float32)
    params['bf'] = 0.1 * jax.random.normal(keys[-1], (Cout,), jnp.float32)
    return params


def build_operators(params, C, Cout, H, W):
    w1 = [np.asarray(w, np.float32) for w in params['w1']]       # (C, C)
    b1 = [np.asarray(b, np.float32) for b in params['b1']]
    wf = np.asarray(params['wf'], np.float32)                    # (Cout, 5C, 3, 3)
    bf = np.asarray(params['bf'], np.float32)
    eye_c = np.eye(C, dtype=np.float32)

    hs, ws_ = [], []
    ph_list, rpw_list, brow_list, uh_list, ruw_list = [], [], [], [], []
    ref_uh, ref_uw = [], []
    for lvl in range(NUM_LAYERS):
        k = 2 * 2 ** (lvl + 1)                                   # 4, 8, 16, 32
        h, w = H // k, W // k
        hs.append(h)
        ws_.append(w)
        ph = _pool_matrix(h, H)                                  # (h, H)
        pw = _pool_matrix(w, W)                                  # (w, W)
        uh = _upsample_matrix(H, h)                              # (H, h)
        uw = _upsample_matrix(W, w)                              # (W, w)
        # rpw[x*C+ci, q*C+co] = pw[q, x] * w1[co, ci]
        rpw = np.einsum('qx,oi->xiqo', pw, w1[lvl]).reshape(W * C, w * C)
        # ruw[q*C+c, x*C+c'] = uw[x, q] * delta[c, c']
        ruw = np.einsum('xq,cd->qcxd', uw, eye_c).reshape(w * C, W * C)
        ph_list.append(ph)
        rpw_list.append(rpw)
        brow_list.append(np.tile(b1[lvl], w).astype(np.float32))
        uh_list.append(uh)
        ruw_list.append(ruw)
        ref_uh.append(uh)
        ref_uw.append(uw)

    sum_h = sum(hs)
    sum_wc = sum(w * C for w in ws_)

    pstack = np.concatenate(ph_list, axis=0)                     # (Sh, H)
    rpw_wide = np.concatenate(rpw_list, axis=1)                  # (W*C, Swc)
    brow_wide = np.concatenate(brow_list)[None, :]               # (1, Swc)
    uh_cat = np.concatenate(uh_list, axis=1)                     # (H, Sh)

    mask = np.zeros((sum_h, sum_wc), np.float32)                 # block diagonal
    ro = co = 0
    for lvl in range(NUM_LAYERS):
        h, wc = hs[lvl], ws_[lvl] * C
        mask[ro:ro + h, co:co + wc] = 1.0
        ro += h
        co += wc

    # Full fusion operator per dy (reflect W-shift x 3x3 weights), then fold the
    # per-level bilinear W-upsample (ruw) into the level blocks.
    wf5 = wf.reshape(Cout, NUM_LAYERS + 1, C, 3, 3)
    g = np.zeros((3, (NUM_LAYERS + 1) * W * C, W * Cout), np.float32)
    for dy in range(3):
        for dx in range(3):
            sw = np.zeros((W, W), np.float32)
            for x in range(W):
                sw[x, _reflect(x + dx - 1, W)] = 1.0
            wsub = wf5[:, :, :, dy, dx]                          # (Cout, 5, C)
            g[dy] += np.einsum('xz,olc->lzcxo', sw, wsub).reshape(
                (NUM_LAYERS + 1) * W * C, W * Cout)

    gid_cols, glvl_cols = [], []
    for dy in range(3):
        gid_cols.append(g[dy, NUM_LAYERS * W * C:, :])           # identity branch
        folded = [ruw_list[l] @ g[dy, l * W * C:(l + 1) * W * C, :]
                  for l in range(NUM_LAYERS)]                    # (w_l*C, W*Cout)
        glvl_cols.append(np.concatenate(folded, axis=0))         # (Swc, W*Cout)
    gid_all = np.concatenate(gid_cols, axis=1)                   # (W*C, 3*W*Cout)
    glvl_all = np.concatenate(glvl_cols, axis=1)                 # (Swc, 3*W*Cout)

    bfrow = np.tile(bf, W)[None, :].astype(np.float32)           # (1, W*Cout)

    bf16 = jnp.bfloat16
    return {
        'pstack': jnp.asarray(pstack, bf16),
        'rpw_wide': jnp.asarray(rpw_wide, bf16),
        'brow_wide': jnp.asarray(brow_wide, jnp.float32),
        'mask': jnp.asarray(mask, bf16),
        'uh_cat': jnp.asarray(uh_cat, bf16),
        'gid_all': jnp.asarray(gid_all, bf16),
        'glvl_all': jnp.asarray(glvl_all, bf16),
        'bfrow': jnp.asarray(bfrow, jnp.float32),
        'cout': Cout,
        'ref_uh': [jnp.asarray(m) for m in ref_uh],
        'ref_uw': [jnp.asarray(m) for m in ref_uw],
    }


# ---------------------------------------------------------------------------
# SPP forward: one fused pallas_call.
# ---------------------------------------------------------------------------
def spp_forward(x, ops):
    N, C, H, W = x.shape
    Cout = ops['cout']
    # Largest pyramid level pools with kernel 32; lane widths assume W*C, W*Cout >= 128.
    assert H % 32 == 0 and W % 32 == 0, "SPP needs H, W divisible by 32"

    # NCHW -> channels-last (N, H, W*C) in bf16; tiny XLA transpose, kernel stays clean.
    x_hwc = jnp.transpose(x, (0, 2, 3, 1)).reshape(N, H, W * C).astype(jnp.bfloat16)

    mats = [ops['pstack'], ops['rpw_wide'], ops['brow_wide'], ops['mask'],
            ops['uh_cat'], ops['gid_all'], ops['glvl_all'], ops['bfrow']]

    kern = functools.partial(_spp_kernel, H=H, WCout=W * Cout)

    def _const(nd):
        return lambda n: (0,) * nd

    in_specs = [pl.BlockSpec((1, H, W * C), lambda n: (n, 0, 0))]
    in_specs += [pl.BlockSpec(m.shape, _const(m.ndim)) for m in mats]

    out = pl.pallas_call(
        kern,
        out_shape=jax.ShapeDtypeStruct((N, H, W * Cout), jnp.float32),
        grid=(N,),
        in_specs=in_specs,
        out_specs=pl.BlockSpec((1, H, W * Cout), lambda n: (n, 0, 0)),
        compiler_params=pltpu.CompilerParams(
            dimension_semantics=("parallel",)),
    )(x_hwc, *mats)

    # (N, H, W*Cout) -> NCHW
    return out.reshape(N, H, W, Cout).transpose(0, 3, 1, 2)


# ---------------------------------------------------------------------------
# Pure-JAX f32 reference (for numerical validation only).
# ---------------------------------------------------------------------------
def spp_reference(x, params, ops):
    N, C, H, W = x.shape
    Cout = params['bf'].shape[0]
    outs = []
    for lvl in range(NUM_LAYERS):
        k = 2 * 2 ** (lvl + 1)
        h, w = H // k, W // k
        pooled = x.reshape(N, C, h, k, w, k).mean(axis=(3, 5))
        conv = (jnp.einsum('oc,nchw->nohw', params['w1'][lvl], pooled)
                + params['b1'][lvl].reshape(1, C, 1, 1))
        act = _leaky(conv)
        up = jnp.einsum('Hp,nopq,Wq->noHW', ops['ref_uh'][lvl], act,
                        ops['ref_uw'][lvl])
        outs.append(up)
    outs.append(x)
    cat = jnp.concatenate(outs, axis=1)
    xp = jnp.pad(cat, ((0, 0), (0, 0), (1, 1), (1, 1)), mode='reflect')
    y = lax.conv_general_dilated(xp, params['wf'], (1, 1), 'VALID',
                                 dimension_numbers=('NCHW', 'OIHW', 'NCHW'))
    y = y + params['bf'].reshape(1, Cout, 1, 1)
    return _leaky(y)


if __name__ == "__main__":
    N, C, H, W = 2, 4, 32, 32       # H, W >= 32 so the largest (32x32) pool is valid
    OUT_C = 8

    x = jax.random.normal(jax.random.PRNGKey(0), (N, C, H, W), jnp.float32)
    params = init_params(jax.random.PRNGKey(42), C, OUT_C)
    ops = build_operators(params, C, OUT_C, H, W)

    fwd = jax.jit(lambda xx: spp_forward(xx, ops))
    out = jax.block_until_ready(fwd(x))

    assert out.shape == (N, OUT_C, H, W), out.shape
    assert out.dtype == jnp.float32
    assert bool(jnp.all(jnp.isfinite(out)))

    # Numerical check against a straightforward pure-JAX f32 implementation
    # (tolerance loosened to absorb bf16 MXU operands; f32 accumulation keeps it tight).
    ref = jax.block_until_ready(spp_reference(x, params, ops))
    np.testing.assert_allclose(np.asarray(out), np.asarray(ref),
                               rtol=1e-1, atol=1e-1)

    print("KERNEL_OK")
</pallas_src>

<mosaic_0001>
module attributes {stable_mosaic.version = 11 : i64} {
  func.func @_spp_kernel(%arg0: i32, %arg1: memref<1x32x128xbf16, #tpu.memory_space<vmem>>, %arg2: memref<15x32xbf16, #tpu.memory_space<vmem>>, %arg3: memref<128x60xbf16, #tpu.memory_space<vmem>>, %arg4: memref<1x60xf32, #tpu.memory_space<vmem>>, %arg5: memref<15x60xbf16, #tpu.memory_space<vmem>>, %arg6: memref<32x15xbf16, #tpu.memory_space<vmem>>, %arg7: memref<128x768xbf16, #tpu.memory_space<vmem>>, %arg8: memref<60x768xbf16, #tpu.memory_space<vmem>>, %arg9: memref<1x256xf32, #tpu.memory_space<vmem>>, %arg10: memref<1x32x256xf32, #tpu.memory_space<vmem>>) attributes {dimension_semantics = [#tpu.dimension_semantics<parallel>], iteration_bounds = array<i64: 2>, scalar_prefetch = 0 : i64, scratch_operands = 0 : i64, tpu.core_type = #tpu.core_type<tc>, window_params = [{transform_indices = @transform_0, window_bounds = array<i64: 1, 32, 128>}, {pipeline_mode = #tpu.pipeline_mode<synchronous>, transform_indices = @transform_1, window_bounds = array<i64: 15, 32>}, {pipeline_mode = #tpu.pipeline_mode<synchronous>, transform_indices = @transform_2, window_bounds = array<i64: 128, 60>}, {pipeline_mode = #tpu.pipeline_mode<synchronous>, transform_indices = @transform_3, window_bounds = array<i64: 1, 60>}, {pipeline_mode = #tpu.pipeline_mode<synchronous>, transform_indices = @transform_4, window_bounds = array<i64: 15, 60>}, {pipeline_mode = #tpu.pipeline_mode<synchronous>, transform_indices = @transform_5, window_bounds = array<i64: 32, 15>}, {pipeline_mode = #tpu.pipeline_mode<synchronous>, transform_indices = @transform_6, window_bounds = array<i64: 128, 768>}, {pipeline_mode = #tpu.pipeline_mode<synchronous>, transform_indices = @transform_7, window_bounds = array<i64: 60, 768>}, {pipeline_mode = #tpu.pipeline_mode<synchronous>, transform_indices = @transform_8, window_bounds = array<i64: 1, 256>}, {transform_indices = @transform_9, window_bounds = array<i64: 1, 32, 256>}]} {
    %c0 = arith.constant 0 : index
    %c0_0 = arith.constant 0 : index
    %c0_1 = arith.constant 0 : index
    %0 = vector.load %arg1[%c0, %c0_0, %c0_1] : memref<1x32x128xbf16, #tpu.memory_space<vmem>>, vector<1x32x128xbf16>
    %1 = vector.shape_cast %0 : vector<1x32x128xbf16> to vector<32x128xbf16>
    %c0_2 = arith.constant 0 : index
    %c0_3 = arith.constant 0 : index
    %2 = vector.load %arg2[%c0_2, %c0_3] : memref<15x32xbf16, #tpu.memory_space<vmem>>, vector<15x32xbf16>
    %cst = arith.constant dense<0.000000e+00> : vector<15x128xf32>
    %3 = tpu.matmul %2, %1, %cst {dimension_numbers = #tpu.dot_dimension_numbers<[1], [0], [0], [1], [0, 0, 1, 1], [], []>} : vector<15x32xbf16>, vector<32x128xbf16>, vector<15x128xf32> -> vector<15x128xf32>
    %4 = arith.truncf %3 : vector<15x128xf32> to vector<15x128xbf16>
    %c0_4 = arith.constant 0 : index
    %c0_5 = arith.constant 0 : index
    %5 = vector.load %arg3[%c0_4, %c0_5] : memref<128x60xbf16, #tpu.memory_space<vmem>>, vector<128x60xbf16>
    %cst_6 = arith.constant dense<0.000000e+00> : vector<15x60xf32>
    %6 = tpu.matmul %4, %5, %cst_6 {dimension_numbers = #tpu.dot_dimension_numbers<[1], [0], [0], [1], [0, 0, 1, 1], [], []>} : vector<15x128xbf16>, vector<128x60xbf16>, vector<15x60xf32> -> vector<15x60xf32>
    %c0_7 = arith.constant 0 : index
    %c0_8 = arith.constant 0 : index
    %7 = vector.load %arg4[%c0_7, %c0_8] : memref<1x60xf32, #tpu.memory_space<vmem>>, vector<1x60xf32>
    %8 = vector.broadcast %7 : vector<1x60xf32> to vector<15x60xf32>
    %9 = arith.addf %6, %8 : vector<15x60xf32>
    %cst_9 = arith.constant 0.000000e+00 : f32
    %10 = vector.broadcast %cst_9 : f32 to vector<15x60xf32>
    %11 = arith.cmpf ogt, %9, %10 : vector<15x60xf32>
    %cst_10 = arith.constant 2.000000e-01 : f32
    %12 = vector.broadcast %cst_10 : f32 to vector<15x60xf32>
    %13 = arith.mulf %12, %9 : vector<15x60xf32>
    %14 = arith.select %11, %9, %13 : vector<15x60xi1>, vector<15x60xf32>
    %15 = arith.truncf %14 : vector<15x60xf32> to vector<15x60xbf16>
    %c0_11 = arith.constant 0 : index
    %c0_12 = arith.constant 0 : index
    %16 = vector.load %arg5[%c0_11, %c0_12] : memref<15x60xbf16, #tpu.memory_space<vmem>>, vector<15x60xbf16>
    %17 = arith.mulf %15, %16 : vector<15x60xbf16>
    %c0_13 = arith.constant 0 : index
    %c0_14 = arith.constant 0 : index
    %18 = vector.load %arg6[%c0_13, %c0_14] : memref<32x15xbf16, #tpu.memory_space<vmem>>, vector<32x15xbf16>
    %cst_15 = arith.constant dense<0.000000e+00> : vector<32x60xf32>
    %19 = tpu.matmul %18, %17, %cst_15 {dimension_numbers = #tpu.dot_dimension_numbers<[1], [0], [0], [1], [0, 0, 1, 1], [], []>} : vector<32x15xbf16>, vector<15x60xbf16>, vector<32x60xf32> -> vector<32x60xf32>
    %c0_16 = arith.constant 0 : index
    %c0_17 = arith.constant 0 : index
    %20 = vector.load %arg7[%c0_16, %c0_17] : memref<128x768xbf16, #tpu.memory_space<vmem>>, vector<128x768xbf16>
    %cst_18 = arith.constant dense<0.000000e+00> : vector<32x768xf32>
    %21 = tpu.matmul %1, %20, %cst_18 {dimension_numbers = #tpu.dot_dimension_numbers<[1], [0], [0], [1], [0, 0, 1, 1], [], []>} : vector<32x128xbf16>, vector<128x768xbf16>, vector<32x768xf32> -> vector<32x768xf32>
    %22 = arith.truncf %19 : vector<32x60xf32> to vector<32x60xbf16>
    %c0_19 = arith.constant 0 : index
    %c0_20 = arith.constant 0 : index
    %23 = vector.load %arg8[%c0_19, %c0_20] : memref<60x768xbf16, #tpu.memory_space<vmem>>, vector<60x768xbf16>
    %cst_21 = arith.constant dense<0.000000e+00> : vector<32x768xf32>
    %24 = tpu.matmul %22, %23, %cst_21 {dimension_numbers = #tpu.dot_dimension_numbers<[1], [0], [0], [1], [0, 0, 1, 1], [], []>} : vector<32x60xbf16>, vector<60x768xbf16>, vector<32x768xf32> -> vector<32x768xf32>
    %25 = arith.addf %21, %24 : vector<32x768xf32>
    %26 = vector.extract_strided_slice %25 {offsets = [0, 0], sizes = [32, 256], strides = [1, 1]} : vector<32x768xf32> to vector<32x256xf32>
    %27 = vector.extract_strided_slice %25 {offsets = [0, 256], sizes = [32, 256], strides = [1, 1]} : vector<32x768xf32> to vector<32x256xf32>
    %28 = vector.extract_strided_slice %25 {offsets = [0, 512], sizes = [32, 256], strides = [1, 1]} : vector<32x768xf32> to vector<32x256xf32>
    %29 = vector.extract_strided_slice %26 {offsets = [1, 0], sizes = [1, 256], strides = [1, 1]} : vector<32x256xf32> to vector<1x256xf32>
    %30 = vector.extract_strided_slice %26 {offsets = [0, 0], sizes = [31, 256], strides = [1, 1]} : vector<32x256xf32> to vector<31x256xf32>
    %31 = tpu.concatenate %29, %30 in 0 : vector<1x256xf32>, vector<31x256xf32> -> vector<32x256xf32>
    %32 = vector.extract_strided_slice %28 {offsets = [1, 0], sizes = [31, 256], strides = [1, 1]} : vector<32x256xf32> to vector<31x256xf32>
    %33 = vector.extract_strided_slice %28 {offsets = [30, 0], sizes = [1, 256], strides = [1, 1]} : vector<32x256xf32> to vector<1x256xf32>
    %34 = tpu.concatenate %32, %33 in 0 : vector<31x256xf32>, vector<1x256xf32> -> vector<32x256xf32>
    %35 = arith.addf %27, %31 : vector<32x256xf32>
    %36 = arith.addf %35, %34 : vector<32x256xf32>
    %c0_22 = arith.constant 0 : index
    %c0_23 = arith.constant 0 : index
    %37 = vector.load %arg9[%c0_22, %c0_23] : memref<1x256xf32, #tpu.memory_space<vmem>>, vector<1x256xf32>
    %38 = vector.broadcast %37 : vector<1x256xf32> to vector<32x256xf32>
    %39 = arith.addf %36, %38 : vector<32x256xf32>
    %cst_24 = arith.constant 0.000000e+00 : f32
    %40 = vector.broadcast %cst_24 : f32 to vector<32x256xf32>
    %41 = arith.cmpf ogt, %39, %40 : vector<32x256xf32>
    %cst_25 = arith.constant 2.000000e-01 : f32
    %42 = vector.broadcast %cst_25 : f32 to vector<32x256xf32>
    %43 = arith.mulf %42, %39 : vector<32x256xf32>
    %44 = arith.select %41, %39, %43 : vector<32x256xi1>, vector<32x256xf32>
    %c0_26 = arith.constant 0 : index
    %c0_27 = arith.constant 0 : index
    %c0_28 = arith.constant 0 : index
    %45 = vector.load %arg10[%c0_26, %c0_27, %c0_28] : memref<1x32x256xf32, #tpu.memory_space<vmem>>, vector<1x32x256xf32>
    %46 = vector.shape_cast %45 : vector<1x32x256xf32> to vector<32x256xf32>
    %47 = vector.shape_cast %44 : vector<32x256xf32> to vector<1x32x256xf32>
    tpu.vector_store %arg10[%c0_26, %c0_27, %c0_28], %47 {strides = array<i32>} : memref<1x32x256xf32, #tpu.memory_space<vmem>>, vector<1x32x256xf32>,
    return
  }
  func.func @transform_0(%arg0: i32) -> (i32, i32, i32) {
    %c0_i32 = arith.constant 0 : i32
    %c0_i32_0 = arith.constant 0 : i32
    %c0_i32_1 = arith.constant 0 : i32
    return %arg0, %c0_i32, %c0_i32_0 : i32, i32, i32
  }
  func.func @transform_1(%arg0: i32) -> (i32, i32) {
    %c0_i32 = arith.constant 0 : i32
    %c0_i32_0 = arith.constant 0 : i32
    %c0_i32_1 = arith.constant 0 : i32
    return %c0_i32, %c0_i32_0 : i32, i32
  }
  func.func @transform_2(%arg0: i32) -> (i32, i32) {
    %c0_i32 = arith.constant 0 : i32
    %c0_i32_0 = arith.constant 0 : i32
    %c0_i32_1 = arith.constant 0 : i32
    return %c0_i32, %c0_i32_0 : i32, i32
  }
  func.func @transform_3(%arg0: i32) -> (i32, i32) {
    %c0_i32 = arith.constant 0 : i32
    %c0_i32_0 = arith.constant 0 : i32
    %c0_i32_1 = arith.constant 0 : i32
    return %c0_i32, %c0_i32_0 : i32, i32
  }
  func.func @transform_4(%arg0: i32) -> (i32, i32) {
    %c0_i32 = arith.constant 0 : i32
    %c0_i32_0 = arith.constant 0 : i32
    %c0_i32_1 = arith.constant 0 : i32
    return %c0_i32, %c0_i32_0 : i32, i32
  }
  func.func @transform_5(%arg0: i32) -> (i32, i32) {
    %c0_i32 = arith.constant 0 : i32
    %c0_i32_0 = arith.constant 0 : i32
    %c0_i32_1 = arith.constant 0 : i32
    return %c0_i32, %c0_i32_0 : i32, i32
  }
  func.func @transform_6(%arg0: i32) -> (i32, i32) {
    %c0_i32 = arith.constant 0 : i32
    %c0_i32_0 = arith.constant 0 : i32
    %c0_i32_1 = arith.constant 0 : i32
    return %c0_i32, %c0_i32_0 : i32, i32
  }
  func.func @transform_7(%arg0: i32) -> (i32, i32) {
    %c0_i32 = arith.constant 0 : i32
    %c0_i32_0 = arith.constant 0 : i32
    %c0_i32_1 = arith.constant 0 : i32
    return %c0_i32, %c0_i32_0 : i32, i32
  }
  func.func @transform_8(%arg0: i32) -> (i32, i32) {
    %c0_i32 = arith.constant 0 : i32
    %c0_i32_0 = arith.constant 0 : i32
    %c0_i32_1 = arith.constant 0 : i32
    return %c0_i32, %c0_i32_0 : i32, i32
  }
  func.func @transform_9(%arg0: i32) -> (i32, i32, i32) {
    %c0_i32 = arith.constant 0 : i32
    %c0_i32_0 = arith.constant 0 : i32
    %c0_i32_1 = arith.constant 0 : i32
    return %arg0, %c0_i32, %c0_i32_0 : i32, i32, i32
  }
}

</mosaic_0001>

<bundles_post_ra>
// kernel: _lambda_.1
= control target key start
LH: loop header
LB: loop body
LE: loop exit
PB: predicated region body
PF: predicated region fallthrough
CT: control target
= control target key end

     0   :  { %s1933_s30 = smov 0   ;;  %s2328_s0 = inlined_call_operand.vmem [shape: bf16[2,32,128], index: 0, kind: input, shape index: {}]   ;;  %s2329_s1 = inlined_call_operand.vmem [shape: bf16[15,32], index: 1, kind: input, shape index: {}]   ;;  %s2330_s2 = inlined_call_operand.vmem [shape: bf16[128,60], index: 2, kind: input, shape index: {}]   ;;  %s2331_s3 = inlined_call_operand.vmem [shape: f32[1,60], index: 3, kind: input, shape index: {}]   ;;  %s2332_s4 = inlined_call_operand.vmem [shape: bf16[15,60], index: 4, kind: input, shape index: {}]   ;;  %s2333_s5 = inlined_call_operand.vmem [shape: bf16[32,15], index: 5, kind: input, shape index: {}]   ;;  %s2334_s6 = inlined_call_operand.vmem [shape: bf16[128,768], index: 6, kind: input, shape index: {}]   ;;  %s2335_s7 = inlined_call_operand.vmem [shape: bf16[60,768], index: 7, kind: input, shape index: {}]   ;;  %s2336_s8 = inlined_call_operand.vmem [shape: f32[1,256], index: 8, kind: input, shape index: {}]   ;;  %s2337_s9 = inlined_call_operand.vmem [shape: f32[2,32,256], index: 9, kind: output, shape index: {}]  }
   0x1 LB: > { %s1576_s10 = sadd.s32 4294967295, %s1877_s30   ;;  %p1580_p0 = scmp.ge.s32.totalorder %s1877_s30, 1  ;;  %s1877_s30 = sphi %s1933_s30, %s19_s30  }
   0x2   : > { %p287_p1 = scmp.lt.s32.totalorder %s1877_s30, 3 }
   0x4   : > { %p288_p2 = pnand %p1580_p0, %p287_p1 }
   0x5   : > { %p323_p3 = scmp.lt.s32.totalorder (!%p288_p2), %s1576_s10, 1 }
   0x6   : > { %291 = sbr.rel (%p288_p2) target bundleno = 920 (0x398), region = 56 }
   0xb   : > { %v1879_v0 = vmov 0.0   ;;  %vm1880_vm0 = vmmov 0   ;;  %v1752_v1 = vld [vmem:[%s2330_s2 + $0x38] sm:$0xff]   ;;  %s2339_s10 = smov (!%p323_p3, %s1576_s10), 1  ;;  %v1753_v2 = vld [vmem:[%s2330_s2 + $0x30] sm:$0xff]   ;;  %v1754_v4 = vld [vmem:[%s2330_s2 + $0x28] sm:$0xff]  }
   0xc   : > { %1703 = vmatprep.subr.bf16.mxu0 %v1879_v0  ;;  %1707 = vmatprep.mubr.msk.bf16.mxu0 %vm1880_vm0, %v1879_v0  ;;  %s1686_s15 = sshll.u32 %s2339_s10, 4  ;;  %v1751_v6 = vld [vmem:[%s2329_s1] sm:$0xff]   ;;  %vm357_vm1 = vcmask 261120   ;;  %v1756_v8 = vld [vmem:[%s2330_s2 + $0x18] sm:$0xff]   ;;  %v1757_v9 = vld [vmem:[%s2330_s2 + $0x10] sm:$0xff]   ;;  %vm545_vm2 = vcmask 121856  }
   0xd   : > { %1711 = vmatprep.subr.bf16.mxu1 %v1879_v0  ;;  %1727 = vmatprep.mubr.msk.bf16.mxu1 %vm1880_vm0, %v1879_v0  ;;  %s327_s18 = scalar_lea.vmem %s2328_s0, %s1686_s15  ;;  %v1755_v7 = vld [vmem:[%s2330_s2 + $0x20] sm:$0xff]   ;;  %v1758_v10 = vld [vmem:[%s2330_s2 + $0x8] sm:$0xff]   ;;  %vm803_vm3 = vcmask 1045504   ;;  %vm552_vm4 = vcmask 1046528   ;;  %vm553_vm7 = vcmask 1047552   ;;  %v1881_v33 = vmov 65535  }
   0xe   : > { %1712 = vmatpush3.bf16.msra.mxu1 %v1752_v1  ;;  %v1953_v3 = vld [vmem:[%s327_s18 + $0x8] sm:$0xff]   ;;  %v1959_v5 = vld [vmem:[%s327_s18] sm:$0xff]   ;;  %v554_v34 = vsel %vm552_vm4, 4294967295, %v1881_v33  ;;  %v1765_v41 = vld [vmem:[%s2335_s7 + $0x9c] ss:$24 sps:$4 sm:$0x3f]  }
   0xf   : > { %1713 = vmatprep.subr.bf16.mxu1 %v1879_v0  ;;  %1704 = vmatpush3.bf16.msra.mxu0 %v1953_v3  ;;  %v1759_v11 = vld [vmem:[%s2330_s2] sm:$0xff]   ;;  %v1763_v18 = vld [vmem:[%s2335_s7 + $0x94] ss:$24 sps:$4 sm:$0x3f]   ;;  %v555_v38 = vsel %vm553_vm7, %v554_v34, 0  ;;  %v1882_v57 = vmov 0  }
  0x10   : > { %1705 = vmatprep.subr.bf16.mxu0 %v1879_v0  ;;  %v1761_v17 = vld [vmem:[%s2333_s5] sm:$0xff]   ;;  %v1767_v19 = vld [vmem:[%s2335_s7 + $0x90] ss:$24 sps:$4 sm:$0x3f]   ;;  %v1777_v47 = vld [vmem:[%s2335_s7 + $0x34] ss:$24 sps:$4 sm:$0xff]  }
  0x11   : > { %v805_v20 = vsel %vm803_vm3, %v1767_v19, 0  ;;  %v1771_v21 = vld [vmem:[%s2335_s7 + $0x64] ss:$24 sps:$4 sm:$0xff]   ;;  %v1769_v22 = vld [vmem:[%s2335_s7 + $0x60] ss:$24 sps:$4 sm:$0xff]   ;;  %v1762_v43 = vld [vmem:[%s2333_s5 + $0x8] sm:$0xff]  }
  0x12   : > { %1714 = vmatpush3.bf16.msra.mxu1 %v1753_v2  ;;  %v1589_v23 = vld [vmem:[%s2331_s3] ss:$0 sm:$0xff]  ;;  %v1768_v42 = vld [vmem:[%s2335_s7 + $0x98] ss:$24 sps:$4 sm:$0x3f]   ;;  %vm796_vm8 = vcmask 490496  }
  0x13   : > { %1715 = vmatprep.subr.bf16.mxu1 %v1879_v0  ;;  %1706 = vmatpush3.bf16.msra.mxu0 %v1959_v5  ;;  %v1760_v32 = vld [vmem:[%s2332_s4] sm:$0xff]   ;;  %v811_v44 = vsel %vm803_vm3, %v1768_v42, 0  ;;  %v1780_v48 = vld [vmem:[%s2335_s7 + $0x3c] ss:$24 sps:$4 sm:$0xff]   ;;  %v1775_v49 = vld [vmem:[%s2335_s7 + $0x30] ss:$24 sps:$4 sm:$0xff]  }
  0x14   : > { %v1774_v45 = vld [vmem:[%s2335_s7 + $0x6c] ss:$24 sps:$4 sm:$0xff]   ;;  %v1772_v46 = vld [vmem:[%s2335_s7 + $0x68] ss:$24 sps:$4 sm:$0xff]   ;;  %v1778_v50 = vld [vmem:[%s2335_s7 + $0x38] ss:$24 sps:$4 sm:$0xff]  }
  0x15   : > { %v1783_v51 = vld [vmem:[%s2335_s7 + $0x4] ss:$24 sps:$4 sm:$0xff]   ;;  %v1781_v53 = vld [vmem:[%s2335_s7] ss:$24 sps:$4 sm:$0xff]   ;;  %v1791_v56 = vld [vmem:[%s2334_s6 + $0x154] ss:$24 sps:$4 sm:$0xff]  }
  0x16   : > { %1716 = vmatpush3.bf16.msra.mxu1 %v1754_v4  ;;  %1708 = vmatmul.mubr.msk.bf16.vlgmr.msra.gmra.mxu0 %vm357_vm1, %v1751_v6  ;;  %v1786_v52 = vld [vmem:[%s2335_s7 + $0xc] ss:$24 sps:$4 sm:$0xff]   ;;  %v1784_v54 = vld [vmem:[%s2335_s7 + $0x8] ss:$24 sps:$4 sm:$0xff]   ;;  %v1837_v33 = vld [vmem:[%s2334_s6 + $0x9c] ss:$24 sps:$4 sm:$0xff]  }
  0x17   : > { %1717 = vmatprep.subr.bf16.mxu1 %v1879_v0  ;;  %1733 = vmatprep.mubr.msk.bf16.mxu0 %vm545_vm2, %v1761_v17  ;;  %v1787_v55 = vld [vmem:[%s2335_s7 + $0xa4] ss:$24 sps:$4 sm:$0x3f]   ;;  %v1792_v60 = vld [vmem:[%s2335_s7 + $0xa0] ss:$24 sps:$4 sm:$0x3f]  }
  0x18   : > { %v1789_v63 = vld [vmem:[%s2334_s6 + $0x150] ss:$24 sps:$4 sm:$0xff]   ;;  %v817_v1 = vsel %vm803_vm3, %v1792_v60, 0  ;;  %v1795_v2 = vld [vmem:[%s2335_s7 + $0x74] ss:$24 sps:$4 sm:$0xff]   ;;  %vm1392_vm9 = vcmask 1040384  }
  0x19   : > { %v1798_v4 = vld [vmem:[%s2334_s6 + $0x124] ss:$24 sps:$4 sm:$0xff]   ;;  %v1793_v6 = vld [vmem:[%s2335_s7 + $0x70] ss:$24 sps:$4 sm:$0xff]   ;;  %v1813_v17 = vld [vmem:[%s2334_s6 + $0x94] ss:$24 sps:$4 sm:$0xff]  }
  0x1a   : > { %1718 = vmatpush3.bf16.msra.mxu1 %v1755_v7  ;;  %v1796_v7 = vld [vmem:[%s2334_s6 + $0x120] ss:$24 sps:$4 sm:$0xff]   ;;  %v1811_v19 = vld [vmem:[%s2334_s6 + $0x90] ss:$24 sps:$4 sm:$0xff]   ;;  %v1840_v34 = vld [vmem:[%s2334_s6 + $0x164] ss:$24 sps:$4 sm:$0xff]  }
  0x1b   : > { %1719 = vmatprep.subr.bf16.mxu1 %v1879_v0  ;;  %v1852_v42 = vld [vmem:[%s2334_s6 + $0x104] ss:$24 sps:$4 sm:$0xff]   ;;  %s1687_s16 = sshll.u32 %s2339_s10, 6 }
  0x1c   : > { %s2302_s18 = scalar_lea.vmem %s2337_s9, %s1687_s16 }
  0x1e   : > { %1720 = vmatpush3.bf16.msra.mxu1 %v1756_v8  ;;  %v1801_v8 = vld [vmem:[%s2335_s7 + $0x44] ss:$24 sps:$4 sm:$0xff]  }
  0x1f   : > { %1721 = vmatprep.subr.bf16.mxu1 %v1879_v0 }
  0x22   : > { %1722 = vmatpush3.bf16.msra.mxu1 %v1757_v9  ;;  %v1804_v9 = vld [vmem:[%s2334_s6 + $0xf4] ss:$24 sps:$4 sm:$0xff]  }
  0x23   : > { %1723 = vmatprep.subr.bf16.mxu1 %v1879_v0 }
  0x26   : > { %1724 = vmatpush3.bf16.msra.mxu1 %v1758_v10  ;;  %v1799_v10 = vld [vmem:[%s2335_s7 + $0x40] ss:$24 sps:$4 sm:$0xff]  }
  0x27   : > { %1725 = vmatprep.subr.bf16.mxu1 %v1879_v0 }
  0x2a   : > { %1726 = vmatpush3.bf16.msra.mxu1 %v1759_v11  ;;  %v1802_v11 = vld [vmem:[%s2334_s6 + $0xf0] ss:$24 sps:$4 sm:$0xff]  }
  0x2b   : > { %1627 = vmatprep.subr.msk.bf16.mxu1 %vm803_vm3, %v1763_v18  ;;  %v1816_v18 = vld [vmem:[%s2334_s6 + $0x15c] ss:$24 sps:$4 sm:$0xff]  }
  0xd6   : > { %v395_v12 = vpop.f32.mrf.mxu0 }
  0xd8   : > { %v1709_v13 = vpop.f32.mrf.mxu0 }
  0xd9   : > { %v1807_v13 = vld [vmem:[%s2335_s7 + $0x14] ss:$24 sps:$4 sm:$0xff]  }
  0xda   : > { %v398_v14 = vpop.f32.mrf.mxu0 }
  0xdb   : > { %v402_v15 = vpack.c.bf16 %v398_v14, %v395_v12  ;;  %v1810_v14 = vld [vmem:[%s2334_s6 + $0xc4] ss:$24 sps:$4 sm:$0xff]  }
  0xdc   : > { %v1710_v16 = vpop.f32.mrf.mxu0 }
  0xdd   : > { %1728 = vmatmul.mubr.bf16.vlgmr.msra.gmra.mxu1 %v402_v15  ;;  %v1805_v15 = vld [vmem:[%s2335_s7 + $0x10] ss:$24 sps:$4 sm:$0xff]   ;;  %v1808_v16 = vld [vmem:[%s2334_s6 + $0xc0] ss:$24 sps:$4 sm:$0xff]  }
  0xde   : > { %831 = vmatpush1.bf16.msra.mxu1 %v805_v20  ;;  %854 = vmatprep.mubr.bf16.mxu1 %v1882_v57  ;;  %v1814_v20 = vld [vmem:[%s2334_s6 + $0x158] ss:$24 sps:$4 sm:$0xff]  }
  0xdf   : > { %832 = vmatprep.subr.bf16.mxu1 %v1771_v21  ;;  %v1819_v21 = vld [vmem:[%s2334_s6 + $0x64] ss:$24 sps:$4 sm:$0xff]  }
  0xe2   : > { %833 = vmatpush1.bf16.msra.mxu1 %v1769_v22  ;;  %v1822_v22 = vld [vmem:[%s2334_s6 + $0x12c] ss:$24 sps:$4 sm:$0xff]  }
  0xe3   : > { %834 = vmatprep.subr.bf16.mxu1 %v1777_v47  ;;  %v1853_v47 = vld [vmem:[%s2334_s6 + $0x8] ss:$24 sps:$4 sm:$0xff]  }
  0xe6   : > { %835 = vmatpush1.bf16.msra.mxu1 %v1775_v49  ;;  %v1861_v49 = vld [vmem:[%s2334_s6 + $0xa4] ss:$24 sps:$4 sm:$0xff]  }
  0xe7   : > { %836 = vmatprep.subr.bf16.mxu1 %v1783_v51  ;;  %v1864_v51 = vld [vmem:[%s2334_s6 + $0x74] ss:$24 sps:$4 sm:$0xff]  }
  0xea   : > { %837 = vmatpush1.bf16.msra.mxu1 %v1781_v53  ;;  %v1867_v53 = vld [vmem:[%s2334_s6 + $0x44] ss:$24 sps:$4 sm:$0xff]  }
  0xeb   : > { %1633 = vmatprep.subr.msk.bf16.mxu1 %vm803_vm3, %v1787_v55  ;;  %v1870_v55 = vld [vmem:[%s2334_s6 + $0x14] ss:$24 sps:$4 sm:$0xff]  }
 0x19d   : > { %v508_v24 = vpop.f32.mrf.mxu1 }
 0x19e   : > { %v509_v25 = vadd.f32 %v1589_v23, %v508_v24  ;;  %v1820_v24 = vld [vmem:[%s2334_s6 + $0x128] ss:$24 sps:$4 sm:$0xff]  }
 0x19f   : > { %v1729_v26 = vpop.f32.mrf.mxu1 }
 0x1a0   : > { %v517_v28 = vmul.f32 0.2, %v509_v25  ;;  %vm515_vm5 = vcmp.gt.f32.partialorder %v509_v25, 0.0  ;;  %v1828_v26 = vld [vmem:[%s2334_s6 + $0xfc] ss:$24 sps:$4 sm:$0xff]  }
 0x1a1   : > { %v511_v27 = vpop.f32.mrf.mxu1 }
 0x1a2   : > { %v512_v29 = vadd.f32 %v1589_v23, %v511_v27  ;;  %v519_v35 = vsel %vm515_vm5, %v509_v25, %v517_v28  ;;  %v1817_v23 = vld [vmem:[%s2334_s6 + $0x60] ss:$24 sps:$4 sm:$0xff]   ;;  %v1825_v25 = vld [vmem:[%s2334_s6 + $0x34] ss:$24 sps:$4 sm:$0xff]   ;;  %v1823_v27 = vld [vmem:[%s2334_s6 + $0x30] ss:$24 sps:$4 sm:$0xff]  }
 0x1a3   : > { %v1730_v30 = vpop.f32.mrf.mxu1  ;;  %v1826_v28 = vld [vmem:[%s2334_s6 + $0xf8] ss:$24 sps:$4 sm:$0xff]  }
 0x1a4   : > { %vm516_vm6 = vcmp.gt.f32.partialorder %v512_v29, 0.0  ;;  %v518_v31 = vmul.f32 0.2, %v512_v29  ;;  %v1834_v30 = vld [vmem:[%s2334_s6 + $0xcc] ss:$24 sps:$4 sm:$0xff]  }
 0x1a6   : > { %v520_v36 = vsel %vm516_vm6, %v512_v29, %v518_v31  ;;  %v1831_v29 = vld [vmem:[%s2334_s6 + $0x4] ss:$24 sps:$4 sm:$0xff]   ;;  %v1829_v31 = vld [vmem:[%s2334_s6] ss:$24 sps:$4 sm:$0xff]  }
 0x1a7   : > { %v521_v37 = vpack.c.bf16 %v520_v36, %v519_v35  ;;  %v1835_v35 = vld [vmem:[%s2334_s6 + $0x98] ss:$24 sps:$4 sm:$0xff]  }
 0x1a8   : > { %v1838_v36 = vld [vmem:[%s2334_s6 + $0x160] ss:$24 sps:$4 sm:$0xff]  }
 0x1a9   : > { %v530_v39 = vmul.bf16 %v1760_v32, %v521_v37  ;;  %v1832_v32 = vld [vmem:[%s2334_s6 + $0xc8] ss:$24 sps:$4 sm:$0xff]   ;;  %v1843_v37 = vld [vmem:[%s2334_s6 + $0x6c] ss:$24 sps:$4 sm:$0xff]  }
 0x1ab   : > { %v557_v40 = vand.u32 %v555_v38, %v530_v39  ;;  %v1846_v38 = vld [vmem:[%s2334_s6 + $0x134] ss:$24 sps:$4 sm:$0xff]   ;;  %v1841_v39 = vld [vmem:[%s2334_s6 + $0x68] ss:$24 sps:$4 sm:$0xff]  }
 0x1ad   : > { %1731 = vmatprep.subr.bf16.mxu0 %v557_v40 }
 0x1ae   : > { %1732 = vmatpush3.bf16.msra.mxu0 %v557_v40  ;;  %v1844_v40 = vld [vmem:[%s2334_s6 + $0x130] ss:$24 sps:$4 sm:$0xff]  }
 0x1af   : > { %1630 = vmatprep.subr.msk.bf16.mxu0 %vm803_vm3, %v1765_v41  ;;  %v1849_v41 = vld [vmem:[%s2334_s6 + $0x3c] ss:$24 sps:$4 sm:$0xff]  }
 0x1b1   : > { %1734 = vmatmul.mubr.msk.bf16.vlgmr.msra.gmra.mxu0 %vm545_vm2, %v1762_v43  ;;  %v1847_v43 = vld [vmem:[%s2334_s6 + $0x38] ss:$24 sps:$4 sm:$0xff]  }
 0x1b2   : > { %884 = vmatpush1.bf16.msra.mxu0 %v811_v44  ;;  %907 = vmatprep.mubr.bf16.mxu0 %v1882_v57  ;;  %v1850_v44 = vld [vmem:[%s2334_s6 + $0x100] ss:$24 sps:$4 sm:$0xff]  }
 0x1b3   : > { %885 = vmatprep.subr.bf16.mxu0 %v1774_v45  ;;  %v1855_v45 = vld [vmem:[%s2334_s6 + $0xc] ss:$24 sps:$4 sm:$0xff]  }
 0x1b6   : > { %886 = vmatpush1.bf16.msra.mxu0 %v1772_v46  ;;  %v1858_v46 = vld [vmem:[%s2334_s6 + $0xd4] ss:$24 sps:$4 sm:$0xff]  }
 0x1b7   : > { %887 = vmatprep.subr.bf16.mxu0 %v1780_v48  ;;  %v1856_v48 = vld [vmem:[%s2334_s6 + $0xd0] ss:$24 sps:$4 sm:$0xff]  }
 0x1ba   : > { %888 = vmatpush1.bf16.msra.mxu0 %v1778_v50  ;;  %v1859_v50 = vld [vmem:[%s2334_s6 + $0xa0] ss:$24 sps:$4 sm:$0xff]  }
 0x1bb   : > { %889 = vmatprep.subr.bf16.mxu0 %v1786_v52  ;;  %v1862_v52 = vld [vmem:[%s2334_s6 + $0x70] ss:$24 sps:$4 sm:$0xff]  }
 0x1be   : > { %890 = vmatpush1.bf16.msra.mxu0 %v1784_v54  ;;  %v1865_v54 = vld [vmem:[%s2334_s6 + $0x40] ss:$24 sps:$4 sm:$0xff]  }
 0x1bf   : > { %1221 = vmatprep.subr.bf16.mxu0 %v1791_v56  ;;  %v1868_v56 = vld [vmem:[%s2334_s6 + $0x10] ss:$24 sps:$4 sm:$0xff]  }
 0x271   : > { %v1735_v58 = vpop.f32.mrf.mxu0 }
 0x273   : > { %v593_v59 = vpop.f32.mrf.mxu0 }
 0x275   : > { %v1736_v61 = vpop.f32.mrf.mxu0 }
 0x276   : > { %v657_v12 = vpack.c.bf16 %v1736_v61, %v1735_v58 }
 0x277   : > { %v596_v62 = vpop.f32.mrf.mxu0 }
 0x278   : > { %v656_v0 = vpack.c.bf16 %v596_v62, %v593_v59 }
 0x27a   : > { %1628 = vmatmul.mubr.msk.bf16.vlgmr.msra.gmra.mxu1 %vm796_vm8, %v656_v0  ;;  %1631 = vmatmul.mubr.msk.bf16.vlgmr.msra.gmra.mxu0 %vm796_vm8, %v656_v0 }
 0x27b   : > { %937 = vmatpush1.bf16.msra.mxu1 %v817_v1  ;;  %1222 = vmatpush1.bf16.msra.mxu0 %v1789_v63 }
 0x27c   : > { %938 = vmatprep.subr.bf16.mxu1 %v1795_v2  ;;  %1223 = vmatprep.subr.bf16.mxu0 %v1798_v4 }
 0x27d   : > { %864 = vmatprep.mubr.bf16.mxu1 %v1882_v57  ;;  %917 = vmatprep.mubr.bf16.mxu0 %v1882_v57 }
 0x27f   : > { %939 = vmatpush1.bf16.msra.mxu1 %v1793_v6  ;;  %1224 = vmatpush1.bf16.msra.mxu0 %v1796_v7 }
 0x280   : > { %940 = vmatprep.subr.bf16.mxu1 %v1801_v8  ;;  %1225 = vmatprep.subr.bf16.mxu0 %v1804_v9 }
 0x282   : > { %1629 = vmatmul.mubr.msk.bf16.gmra.mxu1 %vm796_vm8, %v657_v12  ;;  %1632 = vmatmul.mubr.msk.bf16.gmra.mxu0 %vm796_vm8, %v657_v12 }
 0x283   : > { %941 = vmatpush1.bf16.msra.mxu1 %v1799_v10  ;;  %1226 = vmatpush1.bf16.msra.mxu0 %v1802_v11 }
 0x284   : > { %942 = vmatprep.subr.bf16.mxu1 %v1807_v13  ;;  %1227 = vmatprep.subr.bf16.mxu0 %v1810_v14 }
 0x285   : > { %960 = vmatprep.mubr.bf16.mxu1 %v1882_v57  ;;  %1253 = vmatprep.mubr.bf16.mxu0 %v1882_v57 }
 0x287   : > { %943 = vmatpush1.bf16.msra.mxu1 %v1805_v15  ;;  %1228 = vmatpush1.bf16.msra.mxu0 %v1808_v16 }
 0x288   : > { %1229 = vmatprep.subr.bf16.mxu0 %v1813_v17  ;;  %1274 = vmatprep.subr.bf16.mxu1 %v1816_v18 }
 0x28a   : > { %1634 = vmatmul.mubr.msk.bf16.vlgmr.msra.gmra.mxu1 %vm796_vm8, %v656_v0 }
 0x28b   : > { %1230 = vmatpush1.bf16.msra.mxu0 %v1811_v19  ;;  %1275 = vmatpush1.bf16.msra.mxu1 %v1814_v20 }
 0x28c   : > { %1231 = vmatprep.subr.bf16.mxu0 %v1819_v21  ;;  %1276 = vmatprep.subr.bf16.mxu1 %v1822_v22 }
 0x28d   : > { %970 = vmatprep.mubr.bf16.mxu1 %v1882_v57 }
 0x28f   : > { %1232 = vmatpush1.bf16.msra.mxu0 %v1817_v23  ;;  %1277 = vmatpush1.bf16.msra.mxu1 %v1820_v24 }
 0x290   : > { %1233 = vmatprep.subr.bf16.mxu0 %v1825_v25  ;;  %1278 = vmatprep.subr.bf16.mxu1 %v1828_v26  ;;  %v1471_v26 = vlaneseq }
 0x292   : > { %1635 = vmatmul.mubr.msk.bf16.gmra.mxu1 %vm796_vm8, %v657_v12 }
 0x293   : > { %1234 = vmatpush1.bf16.msra.mxu0 %v1823_v27  ;;  %1279 = vmatpush1.bf16.msra.mxu1 %v1826_v28 }
 0x294   : > { %1235 = vmatprep.subr.bf16.mxu0 %v1831_v29  ;;  %1280 = vmatprep.subr.bf16.mxu1 %v1834_v30  ;;  %v1472_v29 = vshrl.u32 %v1471_v26, 7 }
 0x295   : > { %1306 = vmatprep.mubr.bf16.mxu1 %v1882_v57 }
 0x297   : > { %1236 = vmatpush1.bf16.msra.mxu0 %v1829_v31  ;;  %1281 = vmatpush1.bf16.msra.mxu1 %v1832_v32 }
 0x298   : > { %1282 = vmatprep.subr.bf16.mxu1 %v1837_v33  ;;  %1327 = vmatprep.subr.bf16.mxu0 %v1840_v34 }
 0x29a   : > { %1254 = vmatmul.mubr.bf16.vlgmr.msra.gmra.mxu0 %v1959_v5 }
 0x29b   : > { %1283 = vmatpush1.bf16.msra.mxu1 %v1835_v35  ;;  %1328 = vmatpush1.bf16.msra.mxu0 %v1838_v36 }
 0x29c   : > { %1284 = vmatprep.subr.bf16.mxu1 %v1843_v37  ;;  %1329 = vmatprep.subr.bf16.mxu0 %v1846_v38 }
 0x29d   : > { %1263 = vmatprep.mubr.bf16.mxu0 %v1882_v57 }
 0x29f   : > { %1285 = vmatpush1.bf16.msra.mxu1 %v1841_v39  ;;  %1330 = vmatpush1.bf16.msra.mxu0 %v1844_v40  ;;  %v1473_v39 = vsub.s32 0, %v1472_v29  ;;  %v1477_v40 = vsub.s32 1, %v1472_v29 }
 0x2a0   : > { %1286 = vmatprep.subr.bf16.mxu1 %v1849_v41  ;;  %1331 = vmatprep.subr.bf16.mxu0 %v1852_v42 }
 0x2a2   : > { %1264 = vmatmul.mubr.bf16.gmra.mxu0 %v1953_v3 }
 0x2a3   : > { %1287 = vmatpush1.bf16.msra.mxu1 %v1847_v43  ;;  %1332 = vmatpush1.bf16.msra.mxu0 %v1850_v44 }
 0x2a4   : > { %1288 = vmatprep.subr.bf16.mxu1 %v1855_v45  ;;  %1333 = vmatprep.subr.bf16.mxu0 %v1858_v46  ;;  %v1469_v45 = vld [vmem:[%s2336_s8] sm:$0x3] }
 0x2a5   : > { %1359 = vmatprep.mubr.bf16.mxu0 %v1882_v57 }
 0x2a7   : > { %1289 = vmatpush1.bf16.msra.mxu1 %v1853_v47  ;;  %1334 = vmatpush1.bf16.msra.mxu0 %v1856_v48 }
 0x2a8   : > { %1335 = vmatprep.subr.bf16.mxu0 %v1861_v49 }
 0x2aa   : > { %1307 = vmatmul.mubr.bf16.vlgmr.msra.gmra.mxu1 %v1959_v5 }
 0x2ab   : > { %1336 = vmatpush1.bf16.msra.mxu0 %v1859_v50  ;;  %1316 = vmatprep.mubr.bf16.mxu1 %v1882_v57 }
 0x2ac   : > { %1337 = vmatprep.subr.bf16.mxu0 %v1864_v51 }
 0x2af   : > { %1338 = vmatpush1.bf16.msra.mxu0 %v1862_v52 }
 0x2b0   : > { %1339 = vmatprep.subr.bf16.mxu0 %v1867_v53 }
 0x2b2   : > { %1317 = vmatmul.mubr.bf16.gmra.mxu1 %v1953_v3 }
 0x2b3   : > { %1340 = vmatpush1.bf16.msra.mxu0 %v1865_v54 }
 0x2b4   : > { %1341 = vmatprep.subr.bf16.mxu0 %v1870_v55  ;;  %v2270_v55 = vrot.slane %v1469_v45, %v1473_v39 }
 0x2b7   : > { %1342 = vmatpush1.bf16.msra.mxu0 %v1868_v56 }
 0x2ba   : > { %1360 = vmatmul.mubr.bf16.vlgmr.msra.gmra.mxu0 %v1959_v5 }
 0x2bb   : > { %1369 = vmatprep.mubr.bf16.mxu0 %v1882_v57 }
 0x2c2   : > { %1370 = vmatmul.mubr.bf16.gmra.mxu0 %v1953_v3 }
 0x33a   : > { %v856_v58 = vpop.f32.mrf.mxu1  ;;  %v2241_v60 = vpop.f32.mrf.mxu0 }
 0x33c   : > { %v858_v59 = vpop.f32.mrf.mxu1  ;;  %v2243_v63 = vpop.f32.mrf.mxu0 }
 0x33e   : > { %v860_v61 = vpop.f32.mrf.mxu1  ;;  %v2245_v2 = vpop.f32.mrf.mxu0 }
 0x340   : > { %v862_v62 = vpop.f32.mrf.mxu1  ;;  %v2247_v7 = vpop.f32.mrf.mxu0 }
 0x342   : > { %v866_v0 = vpop.f32.mrf.mxu1  ;;  %v2249_v57 = vpop.f32.mrf.mxu0 }
 0x344   : > { %v868_v1 = vpop.f32.mrf.mxu1  ;;  %v2251_v8 = vpop.f32.mrf.mxu0 }
 0x346   : > { %v870_v4 = vpop.f32.mrf.mxu1  ;;  %v2253_v10 = vpop.f32.mrf.mxu0 }
 0x348   : > { %v872_v6 = vpop.f32.mrf.mxu1  ;;  %v2257_v12 = vpop.f32.mrf.mxu0 }
 0x34a   : > { %v962_v5 = vpop.f32.mrf.mxu1 }
 0x34c   : > { %v964_v3 = vpop.f32.mrf.mxu1 }
 0x34e   : > { %v966_v9 = vpop.f32.mrf.mxu1 }
 0x350   : > { %v2255_v11 = vpop.f32.mrf.mxu1 }
 0x352   : > { %v2259_v14 = vpop.f32.mrf.mxu1 }
 0x354   : > { %v2261_v16 = vpop.f32.mrf.mxu1 }
 0x356   : > { %v2263_v18 = vpop.f32.mrf.mxu1 }
 0x358   : > { %v2265_v20 = vpop.f32.mrf.mxu1 }
 0x35a   : > { %v1255_v13 = vpop.f32.mrf.mxu0 }
 0x35b   : > { %v1256_v30 = vadd.f32 %v1255_v13, %v856_v58 }
 0x35c   : > { %v1257_v15 = vpop.f32.mrf.mxu0 }
 0x35d   : > { %v1258_v31 = vadd.f32 %v1257_v15, %v858_v59  ;;  %v1382_v41 = vrot.slane %v1256_v30, 1  ;;  %v1393_v42 = vrot.slane %v1256_v30, 7 }
 0x35e   : > { %v1259_v17 = vpop.f32.mrf.mxu0 }
 0x35f   : > { %v1260_v32 = vadd.f32 %v1259_v17, %v860_v61  ;;  %v1383_v43 = vrot.slane %v1258_v31, 1  ;;  %v1394_v44 = vrot.slane %v1258_v31, 7  ;;  %v1415_v56 = vsel %vm1392_vm9, %v1382_v41, %v1393_v42 }
 0x360   : > { %v1261_v19 = vpop.f32.mrf.mxu0  ;;  %v2274_v61 = vrot.slane %v1469_v45, %v1477_v40 }
 0x361   : > { %v1262_v33 = vadd.f32 %v1261_v19, %v862_v62  ;;  %v1395_v46 = vrot.slane %v1260_v32, 7  ;;  %v1416_v58 = vsel %vm1392_vm9, %v1383_v43, %v1394_v44 }
 0x362   : > { %v1265_v22 = vpop.f32.mrf.mxu0 }
 0x363   : > { %v1266_v34 = vadd.f32 %v1265_v22, %v866_v0  ;;  %v1397_v47 = vrot.slane %v1262_v33, 7 }
 0x364   : > { %v1267_v24 = vpop.f32.mrf.mxu0 }
 0x365   : > { %v1268_v35 = vadd.f32 %v1267_v24, %v868_v1  ;;  %v1399_v50 = vrot.slane %v1266_v34, 7  ;;  %v1396_v1 = vsel %vm1392_vm9, %v1393_v42, %v1395_v46 }
 0x366   : > { %v1269_v27 = vpop.f32.mrf.mxu0 }
 0x367   : > { %v1270_v38 = vadd.f32 %v1269_v27, %v870_v4  ;;  %v1401_v51 = vrot.slane %v1268_v35, 7  ;;  %v1398_v4 = vsel %vm1392_vm9, %v1394_v44, %v1397_v47  ;;  %v1400_v13 = vsel %vm1392_vm9, %v1395_v46, %v1399_v50 }
 0x368   : > { %v1271_v36 = vpop.f32.mrf.mxu0 }
 0x369   : > { %v1272_v48 = vadd.f32 %v1271_v36, %v872_v6  ;;  %v1403_v53 = vrot.slane %v1270_v38, 7  ;;  %v1402_v15 = vsel %vm1392_vm9, %v1397_v47, %v1401_v51 }
 0x36a   : > { %v1308_v21 = vpop.f32.mrf.mxu1 }
 0x36b   : > { %v1405_v62 = vrot.slane %v1272_v48, 7  ;;  %v1309_v0 = vadd.f32 %v1308_v21, %v2241_v60  ;;  %v1404_v60 = vsel %vm1392_vm9, %v1399_v50, %v1403_v53 }
 0x36c   : > { %v1310_v23 = vpop.f32.mrf.mxu1 }
 0x36d   : > { %v1311_v24 = vadd.f32 %v1310_v23, %v2243_v63  ;;  %v1453_v32 = vadd.f32 %v1415_v56, %v1309_v0  ;;  %v1406_v63 = vsel %vm1392_vm9, %v1401_v51, %v1405_v62 }
 0x36e   : > { %v1312_v25 = vpop.f32.mrf.mxu1 }
 0x370   : > { %v1314_v28 = vpop.f32.mrf.mxu1 }
 0x371   : > { %v1315_v26 = vadd.f32 %v1314_v28, %v2247_v7 }
 0x372   : > { %v1318_v37 = vpop.f32.mrf.mxu1 }
 0x373   : > { %v1319_v27 = vadd.f32 %v1318_v37, %v2249_v57  ;;  %v1454_v57 = vadd.f32 %v1416_v58, %v1311_v24  ;;  %v1456_v34 = vadd.f32 %v1398_v4, %v1315_v26 }
 0x374   : > { %v1320_v52 = vpop.f32.mrf.mxu1 }
 0x375   : > { %v1457_v37 = vadd.f32 %v1400_v13, %v1319_v27 }
 0x376   : > { %v1322_v17 = vpop.f32.mrf.mxu1 }
 0x378   : > { %v1324_v35 = vpop.f32.mrf.mxu1 }
 0x37a   : > { %v1361_v49 = vpop.f32.mrf.mxu0 }
 0x37b   : > { %v1362_v59 = vadd.f32 %v1361_v49, %v962_v5  ;;  %v1313_v5 = vadd.f32 %v1312_v25, %v2245_v2 }
 0x37c   : > { %v1363_v54 = vpop.f32.mrf.mxu0 }
 0x37d   : > { %v1364_v19 = vadd.f32 %v1363_v54, %v964_v3  ;;  %v1425_v29 = vrot.slane %v1362_v59, 1  ;;  %v1321_v3 = vadd.f32 %v1320_v52, %v2251_v8  ;;  %v1455_v33 = vadd.f32 %v1396_v1, %v1313_v5 }
 0x37e   : > { %v1365_v6 = vpop.f32.mrf.mxu0 }
 0x37f   : > { %v1366_v22 = vadd.f32 %v1365_v6, %v966_v9  ;;  %v1323_v9 = vadd.f32 %v1322_v17, %v2253_v10  ;;  %v1428_v23 = vrot.slane %v1364_v19, 1  ;;  %v1458_v39 = vadd.f32 %v1402_v15, %v1321_v3 }
 0x380   : > { %v1367_v21 = vpop.f32.mrf.mxu0 }
 0x381   : > { %v1426_v30 = vrot.slane %v1366_v22, 1  ;;  %v1368_v31 = vadd.f32 %v1367_v21, %v2255_v11  ;;  %v1459_v40 = vadd.f32 %v1404_v60, %v1323_v9 }
 0x382   : > { %v1371_v2 = vpop.f32.mrf.mxu0 }
 0x383   : > { %v1427_v7 = vsel %vm552_vm4, %v1425_v29, %v1426_v30  ;;  %v1429_v25 = vrot.slane %v1368_v31, 1  ;;  %v1372_v28 = vadd.f32 %v1371_v2, %v2259_v14  ;;  %v1325_v14 = vadd.f32 %v1324_v35, %v2257_v12 }
 0x384   : > { %v1461_v11 = vadd.f32 %v1453_v32, %v1427_v7  ;;  %v1373_v36 = vpop.f32.mrf.mxu0 }
 0x385   : > { %v1430_v8 = vsel %vm552_vm4, %v1428_v23, %v1429_v25  ;;  %v1431_v10 = vrot.slane %v1372_v28, 1  ;;  %v1374_v38 = vadd.f32 %v1373_v36, %v2261_v16  ;;  %v1460_v17 = vadd.f32 %v1406_v63, %v1325_v14 }
 0x386   : > { %v1481_v41 = vadd.f32 %v2270_v55, %v1461_v11  ;;  %v1462_v42 = vadd.f32 %v1454_v57, %v1430_v8  ;;  %v1375_v43 = vpop.f32.mrf.mxu0 }
 0x387   : > { %v1432_v44 = vsel %vm552_vm4, %v1426_v30, %v1431_v10  ;;  %v1433_v45 = vrot.slane %v1374_v38, 1  ;;  %v1376_v46 = vadd.f32 %v1375_v43, %v2263_v18 }
 0x388   : > { %vm1489_vm10 = vcmp.gt.f32.partialorder %v1481_v41, 0.0  ;;  %v1497_v16 = vmul.f32 0.2, %v1481_v41  ;;  %v1482_v47 = vadd.f32 %v2274_v61, %v1462_v42  ;;  %v1463_v48 = vadd.f32 %v1455_v33, %v1432_v44  ;;  %v1377_v49 = vpop.f32.mrf.mxu0 }
 0x389   : > { %v1434_v50 = vsel %vm552_vm4, %v1429_v25, %v1433_v45  ;;  %v1435_v12 = vrot.slane %v1376_v46, 1  ;;  %v1447_v51 = vrot.slane %v1376_v46, 7  ;;  %v1378_v52 = vadd.f32 %v1377_v49, %v2265_v20 }
 0x38a   : > { %v1505_v18 = vsel %vm1489_vm10, %v1481_v41, %v1497_v16  ;;  %vm1490_vm11 = vcmp.gt.f32.partialorder %v1482_v47, 0.0  ;;  %v1498_v53 = vmul.f32 0.2, %v1482_v47  ;;  %v1483_v54 = vadd.f32 %v2270_v55, %v1463_v48 }
 0x38b   : > { %1513 = vst [vmem:[%s2302_s18] sm:$0xff] %v1505_v18  ;;  %v1464_v56 = vadd.f32 %v1456_v34, %v1434_v50  ;;  %v1436_v58 = vsel %vm552_vm4, %v1431_v10, %v1435_v12  ;;  %v1451_v59 = vsel %vm552_vm4, %v1435_v12, %v1447_v51  ;;  %v1437_v62 = vrot.slane %v1378_v52, 1 }
 0x38c   : > { %v1506_v0 = vsel %vm1490_vm11, %v1482_v47, %v1498_v53  ;;  %vm1491_vm12 = vcmp.gt.f32.partialorder %v1483_v54, 0.0  ;;  %v1499_v1 = vmul.f32 0.2, %v1483_v54  ;;  %v1465_v4 = vadd.f32 %v1457_v37, %v1436_v58 }
 0x38d   : > { %1514 = vst [vmem:[%s2302_s18 + $0x8] sm:$0xff] %v1506_v0  ;;  %v1484_v20 = vadd.f32 %v2274_v61, %v1464_v56  ;;  %v1467_v6 = vadd.f32 %v1459_v40, %v1451_v59  ;;  %v1438_v13 = vsel %vm552_vm4, %v1433_v45, %v1437_v62  ;;  %v1448_v15 = vrot.slane %v1378_v52, 7 }
 0x38e   : > { %v1507_v19 = vsel %vm1491_vm12, %v1483_v54, %v1499_v1  ;;  %v1485_v22 = vadd.f32 %v2270_v55, %v1465_v4  ;;  %v1466_v24 = vadd.f32 %v1458_v39, %v1438_v13 }
 0x38f   : > { %1515 = vst [vmem:[%s2302_s18 + $0x10] sm:$0xff] %v1507_v19  ;;  %vm1492_vm13 = vcmp.gt.f32.partialorder %v1484_v20, 0.0  ;;  %v1500_v5 = vmul.f32 0.2, %v1484_v20  ;;  %v1487_v26 = vadd.f32 %v2270_v55, %v1467_v6  ;;  %v1452_v60 = vsel %vm552_vm4, %v1437_v62, %v1448_v15 }
 0x390   : > { %vm1493_vm14 = vcmp.gt.f32.partialorder %v1485_v22, 0.0  ;;  %v1501_v21 = vmul.f32 0.2, %v1485_v22  ;;  %v1468_v27 = vadd.f32 %v1460_v17, %v1452_v60  ;;  %v1486_v29 = vadd.f32 %v2274_v61, %v1466_v24 }
 0x391   : > { %v1508_v30 = vsel %vm1492_vm13, %v1484_v20, %v1500_v5  ;;  %vm1495_vm15 = vcmp.gt.f32.partialorder %v1487_v26, 0.0  ;;  %v1503_v31 = vmul.f32 0.2, %v1487_v26 }
 0x392   : > { %1516 = vst [vmem:[%s2302_s18 + $0x18] sm:$0xff] %v1508_v30  ;;  %v1509_v32 = vsel %vm1493_vm14, %v1485_v22, %v1501_v21  ;;  %v1488_v3 = vadd.f32 %v2274_v61, %v1468_v27  ;;  %vm1494_vm0 = vcmp.gt.f32.partialorder %v1486_v29, 0.0  ;;  %v1502_v9 = vmul.f32 0.2, %v1486_v29 }
 0x393   : > { %v1511_v55 = vsel %vm1495_vm15, %v1487_v26, %v1503_v31  ;;  %1517 = vst [vmem:[%s2302_s18 + $0x20] sm:$0xff] %v1509_v32 }
 0x394   : > { %1519 = vst [vmem:[%s2302_s18 + $0x30] sm:$0xff] %v1511_v55  ;;  %vm1496_vm1 = vcmp.gt.f32.partialorder %v1488_v3, 0.0  ;;  %v1504_v63 = vmul.f32 0.2, %v1488_v3  ;;  %v1510_v2 = vsel %vm1494_vm0, %v1486_v29, %v1502_v9 }
 0x395   : > { %1518 = vst [vmem:[%s2302_s18 + $0x28] sm:$0xff] %v1510_v2 }
 0x396   : > { %v1512_v23 = vsel %vm1496_vm1, %v1488_v3, %v1504_v63 }
 0x397   : > { %1520 = vst [vmem:[%s2302_s18 + $0x38] sm:$0xff] %v1512_v23 }
 0x398 PF: > { %s19_s30 = sadd.s32 1, %s1877_s30  }
 0x399   : > { %p16_p4 = scmp.ge.s32.totalorder %s19_s30, 4  }
 0x39b   :  { %18 = sbr.rel (!%p16_p4) target bundleno = 1 (0x1), region = 86 }

</bundles_post_ra>
